<compile_context>
chip_gen: v6e
topology: v6e:2x2x1
jax: 0.10.0
libtpu: 0.0.40
codegen_flags: <defaults>
</compile_context>

<pallas_src>
import functools

import jax
import jax.numpy as jnp
from jax import lax
from jax.experimental import pallas as pl
from jax.experimental.pallas import tpu as pltpu


def _projection_head_kernel(x_ref, w1_ref, b1_ref, w2_ref, b2_ref, o_ref,
                            *, use_bf16, approx_gelu):
    """Fused dense -> gelu -> layernorm(no affine) -> dense for one row tile.

    gamma/beta of the LayerNorm are pre-folded into w2/b2 by the wrapper.
    Weights arrive pre-cast (bf16 when use_bf16); only the per-tile
    activation casts happen here.
    """
    x = x_ref[...]                                            # [tn, H]
    if use_bf16:
        x = x.astype(jnp.bfloat16)

    # dense_to_hidden: [tn, H] @ [H, P] + [1, P], f32 accumulation.
    h = jnp.dot(x, w1_ref[...], preferred_element_type=jnp.float32)
    h = h + b1_ref[...]                                       # broadcast [1, P]

    if approx_gelu:
        # tanh approximation (EUP path) — opt-in, differs from torch default
        # by ~1e-3.
        c = jnp.float32(0.7978845608028654)                   # sqrt(2/pi)
        h = 0.5 * h * (1.0 + jnp.tanh(c * (h + 0.044715 * h * h * h)))
    else:
        # exact GELU (torch.nn.functional.gelu default):
        # 0.5*x*(1+erf(x/sqrt(2)))
        inv_sqrt2 = jnp.float32(0.70710678118654752440)
        h = 0.5 * h * (1.0 + lax.erf(h * inv_sqrt2))

    # LayerNorm over last axis, eps=1e-12, biased variance (torch semantics).
    # Affine (gamma, beta) is folded into the following dense.
    mean = jnp.mean(h, axis=-1, keepdims=True)                # [tn, 1]
    centered = h - mean
    var = jnp.mean(centered * centered, axis=-1, keepdims=True)
    ln = centered * lax.rsqrt(var + 1e-12)                    # [tn, P]

    # dense_to_output: [tn, P] @ [P, P] + [1, P]
    if use_bf16:
        ln = ln.astype(jnp.bfloat16)
    out = jnp.dot(ln, w2_ref[...], preferred_element_type=jnp.float32)
    out = out + b2_ref[...]

    o_ref[...] = out.astype(o_ref.dtype)


def _pick_tile(n_rows, tile_n):
    """Row-tile size: multiple of 8, capped to the (8-padded) row count.

    The grid is only split into >= 2 steps (so the 'parallel' axis can shard
    across v7x's two TensorCores) when each half is still >= 512 rows —
    otherwise the extra per-step pipeline overhead outweighs any benefit
    (and v5e/v6e have a single TensorCore anyway)."""
    n_pad8 = ((n_rows + 7) // 8) * 8
    tile = max(8, (min(tile_n, n_pad8) // 8) * 8)
    if tile >= n_pad8 and n_pad8 >= 1024:
        tile = ((n_pad8 // 2 + 7) // 8) * 8
    return tile


@functools.partial(jax.jit,
                   static_argnames=("tile_n", "use_bf16", "approx_gelu"))
def bert_projection_head(x, w1, b1, gamma, beta, w2, b2, *,
                         tile_n=4096, use_bf16=True, approx_gelu=False):
    """x: [..., H] float. Returns [..., P] float32.

    Weights are [in, out]; biases/gamma/beta have P elements each.
    use_bf16=True (default): bf16 MXU operands, f32 accumulation (~1e-3 err).
    use_bf16=False: exact f32 math (matches torch f32 to ~1e-6).
    """
    orig_shape = x.shape
    H = orig_shape[-1]
    P = w1.shape[1]
    x2 = x.reshape(-1, H).astype(jnp.float32)
    N = x2.shape[0]

    # Fold LayerNorm affine into the second dense (mathematically exact):
    #   (z * gamma + beta) @ w2 + b2 == z @ (diag(gamma) @ w2) + (beta @ w2 + b2)
    w2f = w2 * gamma.reshape(P, 1)
    b2f = (beta.reshape(1, P) @ w2 + b2.reshape(1, P)).astype(jnp.float32)
    b1v = b1.reshape(1, P).astype(jnp.float32)

    # Hoisted weight casts: once in the wrapper, not per grid step. Also
    # halves the HBM->VMEM traffic and resident footprint of the weights.
    mm_dtype = jnp.bfloat16 if use_bf16 else jnp.float32
    w1c = w1.astype(mm_dtype)
    w2c = w2f.astype(mm_dtype)

    tile = _pick_tile(N, tile_n)
    num_tiles = pl.cdiv(N, tile)   # ragged N: Pallas masks the last block

    # Small param tensors are kept whole and VMEM-resident (constant index
    # maps => no re-DMA across grid steps).
    full = lambda shape: pl.BlockSpec(shape, lambda i: (0,) * len(shape))

    out = pl.pallas_call(
        functools.partial(_projection_head_kernel,
                          use_bf16=use_bf16, approx_gelu=approx_gelu),
        out_shape=jax.ShapeDtypeStruct((N, P), jnp.float32),
        grid_spec=pltpu.PrefetchScalarGridSpec(
            num_scalar_prefetch=0,
            grid=(num_tiles,),
            in_specs=[
                pl.BlockSpec((tile, H), lambda i: (i, 0)),    # x row-tile
                full((H, P)),                                 # w1
                full((1, P)),                                 # b1
                full((P, P)),                                 # w2 (gamma-folded)
                full((1, P)),                                 # b2 (beta-folded)
            ],
            out_specs=pl.BlockSpec((tile, P), lambda i: (i, 0)),
        ),
        compiler_params=pltpu.CompilerParams(
            dimension_semantics=("parallel",),
            vmem_limit_bytes=48 * 1024 * 1024),   # safe on v7x's 64 MiB VMEM
    )(x2, w1c, b1v, w2c, b2f)

    return out.reshape(orig_shape[:-1] + (P,))


def _reference(x, w1, b1, gamma, beta, w2, b2):
    """Pure-JAX f32 reference mirroring the PyTorch forward."""
    h = x @ w1 + b1
    h = 0.5 * h * (1.0 + lax.erf(h / jnp.sqrt(2.0)))
    mean = jnp.mean(h, axis=-1, keepdims=True)
    var = jnp.mean((h - mean) ** 2, axis=-1, keepdims=True)
    ln = (h - mean) / jnp.sqrt(var + 1e-12) * gamma + beta
    return ln @ w2 + b2


if __name__ == "__main__":
    # Shapes implied by the module: hidden_size=32, projection_size=128,
    # BERT-style input of [batch, seq, hidden] (batch=2, seq=8).
    batch, seq = 2, 8
    hidden_size = 32
    projection_size = 128

    key = jax.random.PRNGKey(0)
    k = jax.random.split(key, 8)

    x = jax.random.normal(k[0], (batch, seq, hidden_size), dtype=jnp.float32)

    # Deterministic synthetic parameters (stored as [in, out] for the kernel).
    w1 = jax.random.normal(k[1], (hidden_size, projection_size), jnp.float32) * 0.05
    b1 = jax.random.normal(k[2], (1, projection_size), jnp.float32) * 0.01
    gamma = 1.0 + 0.1 * jax.random.normal(k[3], (1, projection_size), jnp.float32)
    beta = 0.1 * jax.random.normal(k[4], (1, projection_size), jnp.float32)
    w2 = jax.random.normal(k[5], (projection_size, projection_size), jnp.float32) * 0.05
    b2 = jax.random.normal(k[6], (1, projection_size), jnp.float32) * 0.01

    ref = _reference(x, w1, b1, gamma, beta, w2, b2)

    # Default (bf16 MXU operands, f32 accumulation) path.
    out = jax.block_until_ready(
        bert_projection_head(x, w1, b1, gamma, beta, w2, b2))
    assert out.shape == (batch, seq, projection_size)
    assert jnp.allclose(out, ref, atol=2e-2, rtol=2e-2), "bf16 mismatch vs reference"

    # Exact-f32 path matches the torch-style f32 reference tightly.
    out_f32 = jax.block_until_ready(
        bert_projection_head(x, w1, b1, gamma, beta, w2, b2, use_bf16=False))
    assert jnp.allclose(out_f32, ref, atol=1e-4, rtol=1e-4), "f32 mismatch vs reference"

    # Ragged-N path: row count not a multiple of the tile; no wrapper-side
    # pad/slice — Pallas masks the partial last block.
    x_odd = jax.random.normal(k[7], (3, 7, hidden_size), dtype=jnp.float32)
    out_odd = jax.block_until_ready(
        bert_projection_head(x_odd, w1, b1, gamma, beta, w2, b2, use_bf16=False))
    ref_odd = _reference(x_odd, w1, b1, gamma, beta, w2, b2)
    assert jnp.allclose(out_odd, ref_odd, atol=1e-4, rtol=1e-4), "ragged mismatch"

    print("KERNEL_OK")
</pallas_src>

<mosaic_0001>
module attributes {stable_mosaic.version = 11 : i64} {
  func.func @_projection_head_kernel(%arg0: i32, %arg1: memref<16x32xf32, #tpu.memory_space<vmem>>, %arg2: memref<32x128xbf16, #tpu.memory_space<vmem>>, %arg3: memref<1x128xf32, #tpu.memory_space<vmem>>, %arg4: memref<128x128xbf16, #tpu.memory_space<vmem>>, %arg5: memref<1x128xf32, #tpu.memory_space<vmem>>, %arg6: memref<16x128xf32, #tpu.memory_space<vmem>>) attributes {dimension_semantics = [#tpu.dimension_semantics<parallel>], iteration_bounds = array<i64: 1>, scalar_prefetch = 0 : i64, scratch_operands = 0 : i64, tpu.core_type = #tpu.core_type<tc>, window_params = [{transform_indices = @transform_0, window_bounds = array<i64: 16, 32>}, {pipeline_mode = #tpu.pipeline_mode<synchronous>, transform_indices = @transform_1, window_bounds = array<i64: 32, 128>}, {pipeline_mode = #tpu.pipeline_mode<synchronous>, transform_indices = @transform_2, window_bounds = array<i64: 1, 128>}, {pipeline_mode = #tpu.pipeline_mode<synchronous>, transform_indices = @transform_3, window_bounds = array<i64: 128, 128>}, {pipeline_mode = #tpu.pipeline_mode<synchronous>, transform_indices = @transform_4, window_bounds = array<i64: 1, 128>}, {transform_indices = @transform_5, window_bounds = array<i64: 16, 128>}]} {
    %c0 = arith.constant 0 : index
    %c0_0 = arith.constant 0 : index
    %0 = vector.load %arg1[%c0, %c0_0] : memref<16x32xf32, #tpu.memory_space<vmem>>, vector<16x32xf32>
    %1 = arith.truncf %0 : vector<16x32xf32> to vector<16x32xbf16>
    %c0_1 = arith.constant 0 : index
    %c0_2 = arith.constant 0 : index
    %2 = vector.load %arg2[%c0_1, %c0_2] : memref<32x128xbf16, #tpu.memory_space<vmem>>, vector<32x128xbf16>
    %cst = arith.constant dense<0.000000e+00> : vector<16x128xf32>
    %3 = tpu.matmul %1, %2, %cst {dimension_numbers = #tpu.dot_dimension_numbers<[1], [0], [0], [1], [0, 0, 1, 1], [], []>} : vector<16x32xbf16>, vector<32x128xbf16>, vector<16x128xf32> -> vector<16x128xf32>
    %c0_3 = arith.constant 0 : index
    %c0_4 = arith.constant 0 : index
    %4 = vector.load %arg3[%c0_3, %c0_4] : memref<1x128xf32, #tpu.memory_space<vmem>>, vector<1x128xf32>
    %5 = vector.broadcast %4 : vector<1x128xf32> to vector<16x128xf32>
    %6 = arith.addf %3, %5 : vector<16x128xf32>
    %cst_5 = arith.constant 5.000000e-01 : f32
    %7 = vector.broadcast %cst_5 : f32 to vector<16x128xf32>
    %8 = arith.mulf %7, %6 : vector<16x128xf32>
    %cst_6 = arith.constant 0.707106769 : f32
    %9 = vector.broadcast %cst_6 : f32 to vector<16x128xf32>
    %10 = arith.mulf %6, %9 : vector<16x128xf32>
    %11 = math.erf %10 : vector<16x128xf32>
    %cst_7 = arith.constant 1.000000e+00 : f32
    %12 = vector.broadcast %cst_7 : f32 to vector<16x128xf32>
    %13 = arith.addf %12, %11 : vector<16x128xf32>
    %14 = arith.mulf %8, %13 : vector<16x128xf32>
    %cst_8 = arith.constant dense<0.000000e+00> : vector<16xf32>
    %15 = vector.multi_reduction <add>, %14, %cst_8 [1] : vector<16x128xf32> to vector<16xf32>
    %16 = vector.shape_cast %15 : vector<16xf32> to vector<16x1xf32>
    %cst_9 = arith.constant 1.280000e+02 : f32
    %17 = vector.broadcast %cst_9 : f32 to vector<16x1xf32>
    %18 = arith.divf %16, %17 : vector<16x1xf32>
    %19 = vector.broadcast %18 : vector<16x1xf32> to vector<16x128xf32>
    %20 = arith.subf %14, %19 : vector<16x128xf32>
    %21 = arith.mulf %20, %20 : vector<16x128xf32>
    %cst_10 = arith.constant dense<0.000000e+00> : vector<16xf32>
    %22 = vector.multi_reduction <add>, %21, %cst_10 [1] : vector<16x128xf32> to vector<16xf32>
    %23 = vector.shape_cast %22 : vector<16xf32> to vector<16x1xf32>
    %cst_11 = arith.constant 1.280000e+02 : f32
    %24 = vector.broadcast %cst_11 : f32 to vector<16x1xf32>
    %25 = arith.divf %23, %24 : vector<16x1xf32>
    %cst_12 = arith.constant 9.99999996E-13 : f32
    %26 = vector.broadcast %cst_12 : f32 to vector<16x1xf32>
    %27 = arith.addf %25, %26 : vector<16x1xf32>
    %28 = math.rsqrt %27 : vector<16x1xf32>
    %29 = vector.broadcast %28 : vector<16x1xf32> to vector<16x128xf32>
    %30 = arith.mulf %20, %29 : vector<16x128xf32>
    %31 = arith.truncf %30 : vector<16x128xf32> to vector<16x128xbf16>
    %c0_13 = arith.constant 0 : index
    %c0_14 = arith.constant 0 : index
    %32 = vector.load %arg4[%c0_13, %c0_14] : memref<128x128xbf16, #tpu.memory_space<vmem>>, vector<128x128xbf16>
    %cst_15 = arith.constant dense<0.000000e+00> : vector<16x128xf32>
    %33 = tpu.matmul %31, %32, %cst_15 {dimension_numbers = #tpu.dot_dimension_numbers<[1], [0], [0], [1], [0, 0, 1, 1], [], []>} : vector<16x128xbf16>, vector<128x128xbf16>, vector<16x128xf32> -> vector<16x128xf32>
    %c0_16 = arith.constant 0 : index
    %c0_17 = arith.constant 0 : index
    %34 = vector.load %arg5[%c0_16, %c0_17] : memref<1x128xf32, #tpu.memory_space<vmem>>, vector<1x128xf32>
    %35 = vector.broadcast %34 : vector<1x128xf32> to vector<16x128xf32>
    %36 = arith.addf %33, %35 : vector<16x128xf32>
    %c0_18 = arith.constant 0 : index
    %c0_19 = arith.constant 0 : index
    %37 = vector.load %arg6[%c0_18, %c0_19] : memref<16x128xf32, #tpu.memory_space<vmem>>, vector<16x128xf32>
    tpu.vector_store %arg6[%c0_18, %c0_19], %36 {strides = array<i32>} : memref<16x128xf32, #tpu.memory_space<vmem>>, vector<16x128xf32>,
    return
  }
  func.func @transform_0(%arg0: i32) -> (i32, i32) {
    %c0_i32 = arith.constant 0 : i32
    %c0_i32_0 = arith.constant 0 : i32
    return %arg0, %c0_i32 : i32, i32
  }
  func.func @transform_1(%arg0: i32) -> (i32, i32) {
    %c0_i32 = arith.constant 0 : i32
    %c0_i32_0 = arith.constant 0 : i32
    %c0_i32_1 = arith.constant 0 : i32
    return %c0_i32, %c0_i32_0 : i32, i32
  }
  func.func @transform_2(%arg0: i32) -> (i32, i32) {
    %c0_i32 = arith.constant 0 : i32
    %c0_i32_0 = arith.constant 0 : i32
    %c0_i32_1 = arith.constant 0 : i32
    return %c0_i32, %c0_i32_0 : i32, i32
  }
  func.func @transform_3(%arg0: i32) -> (i32, i32) {
    %c0_i32 = arith.constant 0 : i32
    %c0_i32_0 = arith.constant 0 : i32
    %c0_i32_1 = arith.constant 0 : i32
    return %c0_i32, %c0_i32_0 : i32, i32
  }
  func.func @transform_4(%arg0: i32) -> (i32, i32) {
    %c0_i32 = arith.constant 0 : i32
    %c0_i32_0 = arith.constant 0 : i32
    %c0_i32_1 = arith.constant 0 : i32
    return %c0_i32, %c0_i32_0 : i32, i32
  }
  func.func @transform_5(%arg0: i32) -> (i32, i32) {
    %c0_i32 = arith.constant 0 : i32
    %c0_i32_0 = arith.constant 0 : i32
    return %arg0, %c0_i32 : i32, i32
  }
}

</mosaic_0001>

<bundles_post_ra>
// kernel: bert_projection_head.1
= control target key start
LH: loop header
LB: loop body
LE: loop exit
PB: predicated region body
PF: predicated region fallthrough
CT: control target
= control target key end

     0   :  { %v355_v1 = vmov 0.0   ;;  %vm356_vm0 = vmmov 0   ;;  %vm48_vm1 = vcmask 261120   ;;  %s447_s0 = inlined_call_operand.vmem [shape: f32[16,32], index: 0, kind: input, shape index: {}]   ;;  %s448_s1 = inlined_call_operand.vmem [shape: bf16[32,128], index: 1, kind: input, shape index: {}]   ;;  %s449_s2 = inlined_call_operand.vmem [shape: f32[1,128], index: 2, kind: input, shape index: {}]   ;;  %s450_s3 = inlined_call_operand.vmem [shape: bf16[128,128], index: 3, kind: input, shape index: {}]   ;;  %s451_s4 = inlined_call_operand.vmem [shape: f32[1,128], index: 4, kind: input, shape index: {}]   ;;  %s452_s5 = inlined_call_operand.hbm [shape: f32[16,128], index: 5, kind: output, shape index: {}]  }
   0x1   :  { %v315_v0 = vld [vmem:[%s448_s1 + $0x8] sm:$0xff]   ;;  %282 = vmatprep.subr.bf16.mxu0 %v355_v1  ;;  %290 = vmatprep.subr.bf16.mxu1 %v355_v1  ;;  %v316_v2 = vld [vmem:[%s448_s1] sm:$0xff]  }
   0x2   :  { %283 = vmatpush3.bf16.msra.mxu0 %v315_v0  ;;  %286 = vmatprep.mubr.msk.bf16.mxu0 %vm356_vm0, %v355_v1  ;;  %v22_v3 = vld [vmem:[%s447_s0] sm:$0xff]  ;;  %v23_v4 = vld [vmem:[%s447_s0 + $0x8] sm:$0xff] }
   0x3   :  { %284 = vmatprep.subr.bf16.mxu0 %v355_v1  ;;  %306 = vmatprep.mubr.msk.bf16.mxu1 %vm356_vm0, %v355_v1  ;;  %v24_v5 = vpack.c.bf16 %v23_v4, %v22_v3 }
   0x6   :  { %285 = vmatpush3.bf16.msra.mxu0 %v316_v2 }
   0x7   :  { %10 = vsyncpa [#allocation3], 0  ;;  %v257_v6 = vld [vmem:[%s449_s2] ss:$0 sm:$0xff]  ;;  %v317_v23 = vld [vmem:[%s450_s3 + $0x38] sm:$0xff]  }
   0x8   :  { %291 = vmatpush3.bf16.msra.mxu1 %v317_v23  ;;  %v318_v24 = vld [vmem:[%s450_s3 + $0x30] sm:$0xff]   ;;  %v319_v33 = vld [vmem:[%s450_s3 + $0x28] sm:$0xff]   ;;  %v320_v34 = vld [vmem:[%s450_s3 + $0x20] sm:$0xff]  }
   0x9   :  { %287 = vmatmul.mubr.msk.bf16.vlgmr.msra.gmra.mxu0 %vm48_vm1, %v24_v5  ;;  %292 = vmatprep.subr.bf16.mxu1 %v355_v1  ;;  %v321_v35 = vld [vmem:[%s450_s3 + $0x18] sm:$0xff]   ;;  %v322_v36 = vld [vmem:[%s450_s3 + $0x10] sm:$0xff]   ;;  %v323_v37 = vld [vmem:[%s450_s3 + $0x8] sm:$0xff]  }
   0xa   :  { %v324_v38 = vld [vmem:[%s450_s3] sm:$0xff]   ;;  %s357_s3 = smov [#allocation2]  }
   0xb   :  { %v261_v50 = vld [vmem:[%s451_s4] ss:$0 sm:$0xff]  ;;  %s246_s18 = sshll.u32 %s357_s3, 4  ;;  %s247_s18 = int_to_ptr.vmem [resolvable:$true] %s246_s18 }
   0xc   :  { %293 = vmatpush3.bf16.msra.mxu1 %v318_v24  ;;  %s333_s19 = scalar_lea.vmem %s247_s18, 256  ;;  %p338_p1 = scmp.lt.s32.totalorder %s247_s18, %s247_s18 }
   0xd   :  { %294 = vmatprep.subr.bf16.mxu1 %v355_v1  ;;  %p334_p0 = scmp.ne.s32.totalorder %s247_s18, %s333_s19  ;;  %p339_p2 = scmp.lt.s32.totalorder %s333_s19, %s333_s19 }
   0xf   :  { %p340_p3 = por %p339_p2, %p338_p1 }
  0x10   :  { %295 = vmatpush3.bf16.msra.mxu1 %v319_v33 }
  0x11   :  { %296 = vmatprep.subr.bf16.mxu1 %v355_v1  ;;  %p341_p4 = pnand %p340_p3, %p334_p0 }
  0x14   :  { %297 = vmatpush3.bf16.msra.mxu1 %v320_v34 }
  0x15   :  { %298 = vmatprep.subr.bf16.mxu1 %v355_v1 }
  0x18   :  { %299 = vmatpush3.bf16.msra.mxu1 %v321_v35 }
  0x19   :  { %300 = vmatprep.subr.bf16.mxu1 %v355_v1 }
  0x1c   :  { %301 = vmatpush3.bf16.msra.mxu1 %v322_v36 }
  0x1d   :  { %302 = vmatprep.subr.bf16.mxu1 %v355_v1 }
  0x20   :  { %303 = vmatpush3.bf16.msra.mxu1 %v323_v37 }
  0x21   :  { %304 = vmatprep.subr.bf16.mxu1 %v355_v1 }
  0x24   :  { %305 = vmatpush3.bf16.msra.mxu1 %v324_v38 }
  0xc9   :  { %v86_v7 = vpop.f32.mrf.mxu0 }
  0xca   :  { %v87_v8 = vadd.f32 %v257_v6, %v86_v7 }
  0xcb   :  { %v288_v9 = vpop.f32.mrf.mxu0 }
  0xcc   :  { %v95_v10 = vmul.f32 0.70710677, %v87_v8  ;;  %v93_v16 = vmul.f32 0.5, %v87_v8 }
  0xcd   :  { %v89_v11 = vpop.f32.mrf.mxu0 }
  0xce   :  { %325 = verf.f32 %v95_v10  ;;  %v90_v12 = vadd.f32 %v257_v6, %v89_v11 }
  0xcf   :  { %v289_v13 = vpop.f32.mrf.mxu0 }
  0xd0   :  { %v96_v14 = vmul.f32 0.70710677, %v90_v12  ;;  %v94_v20 = vmul.f32 0.5, %v90_v12 }
  0xd2   :  { %327 = verf.f32 %v96_v14 }
  0xdb   :  { %v326_v15 = vpop.eup %325 }
  0xdc   :  { %v99_v17 = vadd.f32 1.0, %v326_v15 }
  0xde   :  { %v101_v18 = vmul.f32 %v99_v17, %v93_v16 }
  0xdf   :  { %v328_v19 = vpop.eup %327 }
  0xe0   :  { %103 = vadd.xlane.f32.xlu0 %v101_v18  ;;  %v100_v21 = vadd.f32 1.0, %v328_v19 }
  0xe2   :  { %v102_v22 = vmul.f32 %v100_v21, %v94_v20 }
  0xe4   :  { %105 = vadd.xlane.f32.xlu0 %v102_v22 }
 0x169   :  { %v104_v25 = vpop.xlane.xlu0 %103 }
 0x16a   :  { %v108_v26 = vmul.f32 0.0078125, %v104_v25 }
 0x16c   :  { %v110_v27 = vsub.f32 %v101_v18, %v108_v26 }
 0x16d   :  { %v106_v28 = vpop.xlane.xlu0 %105 }
 0x16e   :  { %v109_v29 = vmul.f32 0.0078125, %v106_v28  ;;  %v112_v30 = vmul.f32 %v110_v27, %v110_v27 }
 0x170   :  { %v111_v31 = vsub.f32 %v102_v22, %v109_v29  ;;  %114 = vadd.xlane.f32.xlu1 %v112_v30 }
 0x172   :  { %v113_v32 = vmul.f32 %v111_v31, %v111_v31 }
 0x174   :  { %116 = vadd.xlane.f32.xlu1 %v113_v32 }
 0x1f9   :  { %v115_v39 = vpop.xlane.xlu1 %114 }
 0x1fa   :  { %v118_v40 = vmul.f32 0.0078125, %v115_v39 }
 0x1fc   :  { %v120_v41 = vadd.f32 1e-12, %v118_v40 }
 0x1fd   :  { %v117_v42 = vpop.xlane.xlu1 %116 }
 0x1fe   :  { %v119_v43 = vmul.f32 0.0078125, %v117_v42  ;;  %329 = vrsqrt.f32 %v120_v41 }
 0x200   :  { %v121_v44 = vadd.f32 1e-12, %v119_v43 }
 0x202   :  { %331 = vrsqrt.f32 %v121_v44 }
 0x20b   :  { %v330_v45 = vpop.eup %329 }
 0x20c   :  { %v124_v47 = vmul.f32 %v330_v45, %v110_v27 }
 0x20f   :  { %v332_v46 = vpop.eup %331 }
 0x210   :  { %v125_v48 = vmul.f32 %v332_v46, %v111_v31 }
 0x212   :  { %v126_v49 = vpack.c.bf16 %v125_v48, %v124_v47 }
 0x214   :  { %307 = vmatmul.mubr.bf16.vlgmr.msra.gmra.mxu1 %v126_v49 }
 0x2d4   :  { %v232_v51 = vpop.f32.mrf.mxu1 }
 0x2d5   :  { %v233_v52 = vadd.f32 %v261_v50, %v232_v51 }
 0x2d6   :  { %v308_v53 = vpop.f32.mrf.mxu1 }
 0x2d7   :  { %239 = vst [vmem:[#allocation2] sm:$0xff] %v233_v52 }
 0x2d8   :  { %v235_v54 = vpop.f32.mrf.mxu1 }
 0x2d9   :  { %v236_v55 = vadd.f32 %v261_v50, %v235_v54 }
 0x2da   :  { %v309_v56 = vpop.f32.mrf.mxu1 }
 0x2db   :  { %240 = vst [vmem:[#allocation2 + $0x8] sm:$0xff] %v236_v55 }
 0x2dc   :  { %344 = shalt.err (!%p341_p4)
}
 0x2dd   :  { %s358_s20 = smov 128   ;;  %s359_s4 = smov 8  }
 0x2de   :  { %252 = dma.vmem_to_hbm [thread:$0]  %s247_s18, 256, %s452_s5, [#allocation3], %s358_s20, %s358_s20, %s359_s4  }
 0x2df   :  { %353 = dma.done.wait [#allocation3], 256  }
 0x2e0   :  { %354 = vsyncadd [#allocation3], 4294967040 }
 0x2e1   :  { %256 = vsyncpa [#allocation3], 1 }

</bundles_post_ra>
